<compile_context>
chip_gen: v7x
topology: tpu7x:2x2x1
jax: 0.10.0
libtpu: 0.0.40
codegen_flags: <defaults>
</compile_context>

<pallas_src>
import jax
import jax.numpy as jnp
from jax.experimental import pallas as pl
from jax.experimental.pallas import tpu as pltpu

KSIZE = 3


def _round_up(x, m):
    return ((x + m - 1) // m) * m


def _shift_rows_up(h, k):
    """result[r] = h[(r + k) % M]: rows shifted toward index 0, wrapped tail."""
    if k == 0:
        return h
    # Positive static shift equivalent to -k (np.roll semantics), XLU rotate.
    return pltpu.roll(h, shift=h.shape[0] - k, axis=0)


def _conv1d_relu_fused(h, w_ref, b_ref):
    """h: (M, Cin) f32 flat over (sample, position); w_ref: (3*Cin, Cout) bf16;
    b_ref: (1, Cout) f32. Returns (M, Cout) f32.

    Row r holds the valid conv output for the window starting at flat row r;
    rows whose window crosses a sample boundary (and the wrapped tail rows)
    are garbage by construction and are dropped by the pooling slice."""
    cols = jnp.concatenate([_shift_rows_up(h, k) for k in range(KSIZE)], axis=-1)
    acc = jnp.dot(cols.astype(w_ref.dtype), w_ref[...],
                  preferred_element_type=jnp.float32)
    return jnp.maximum(acc + b_ref[...], 0.0)


def cnn_kernel(xc_ref, w1_ref, b1_ref, w2_ref, b2_ref, w3_ref, b3_ref,
               wf_ref, bf_ref, o_ref):
    m = xc_ref.shape[0]
    tb = o_ref.shape[0]
    seq = m // tb                        # positions per sample (L)
    out_len = seq - 3 * (KSIZE - 1)      # valid positions after 3 'valid' convs

    # Layer 1: im2col precomputed in the wrapper (K=12) -> single MXU matmul.
    h = jnp.dot(xc_ref[...], w1_ref[...], preferred_element_type=jnp.float32)
    h = jnp.maximum(h + b1_ref[...], 0.0)                        # (M, 32) f32
    # Layers 2-3: taps fused into K via XLU rolls; M stays a multiple of 8.
    h = _conv1d_relu_fused(h, w2_ref, b2_ref)                    # (M, 64)
    h = _conv1d_relu_fused(h, w3_ref, b3_ref)                    # (M, 32)

    # Global average pool: layout-preserving row-axis reshape, drop the garbage
    # tail positions, reduce over positions, scale.
    h = h.reshape(tb, seq, h.shape[-1])
    pooled = jnp.sum(h[:, :out_len, :], axis=1) * (1.0 / out_len)  # (TB, 32)

    logits = jnp.dot(pooled, wf_ref[...],
                     preferred_element_type=jnp.float32) + bf_ref[...]
    o_ref[...] = logits.astype(o_ref.dtype)          # dense (TB, 128) lane store


def cnn_forward(x_ncl, params, *, tb=128):
    """x_ncl: (B, C, L) float32 (PyTorch NCL). Returns (B, num_classes)."""
    w1, b1, w2, b2, w3, b3, wf, bf = params
    B, C, L = x_ncl.shape
    num_classes = wf.shape[1]
    assert L >= 3 * (KSIZE - 1) + 1, "need at least one valid position after 3 convs"

    # --- tiling: TB samples/step; force >= 2 grid steps when batch allows (v7x 2 TCs)
    B8 = _round_up(B, 8)
    TB = min(_round_up(tb, 8), B8)
    if B8 >= 16 and B8 // TB < 2:
        TB = _round_up((B8 + 1) // 2, 8)
    B_pad = _round_up(B8, TB)
    NC_pad = _round_up(num_classes, 128)

    # --- input: channels-last, flatten (sample, pos) into rows, wrapper-side im2col
    x_blc = jnp.transpose(x_ncl, (0, 2, 1)).astype(jnp.float32)
    if B_pad != B:
        x_blc = jnp.concatenate(
            [x_blc, jnp.zeros((B_pad - B, L, C), jnp.float32)], axis=0)
    x_flat = x_blc.reshape(B_pad * L, C)
    x_cols = jnp.concatenate(
        [jnp.roll(x_flat, -k, axis=0) for k in range(KSIZE)],
        axis=-1).astype(jnp.bfloat16)                          # (B_pad*L, 3*C)

    # --- weights: taps fused into K; matmul operands bf16, f32 accumulation
    w1f = w1.reshape(KSIZE * w1.shape[1], w1.shape[2]).astype(jnp.bfloat16)
    w2f = w2.reshape(KSIZE * w2.shape[1], w2.shape[2]).astype(jnp.bfloat16)
    w3f = w3.reshape(KSIZE * w3.shape[1], w3.shape[2]).astype(jnp.bfloat16)
    b1f = b1.astype(jnp.float32)
    b2f = b2.astype(jnp.float32)
    b3f = b3.astype(jnp.float32)
    # Lane-pad the classifier so the output store is 128-lane dense.
    wf_p = jnp.zeros((wf.shape[0], NC_pad), jnp.float32).at[:, :num_classes].set(wf)
    bf_p = jnp.zeros((1, NC_pad), jnp.float32).at[:, :num_classes].set(bf)

    full = lambda a: pl.BlockSpec(a.shape, lambda i: (0, 0))
    out = pl.pallas_call(
        cnn_kernel,
        out_shape=jax.ShapeDtypeStruct((B_pad, NC_pad), jnp.float32),
        grid_spec=pltpu.PrefetchScalarGridSpec(
            num_scalar_prefetch=0,
            grid=(B_pad // TB,),
            in_specs=[
                pl.BlockSpec((TB * L, KSIZE * C), lambda i: (i, 0)),
                full(w1f), full(b1f), full(w2f), full(b2f),
                full(w3f), full(b3f), full(wf_p), full(bf_p),
            ],
            out_specs=pl.BlockSpec((TB, NC_pad), lambda i: (i, 0)),
        ),
        compiler_params=pltpu.CompilerParams(
            dimension_semantics=("parallel",),
            vmem_limit_bytes=32 * 1024 * 1024,
        ),
    )(x_cols, w1f, b1f, w2f, b2f, w3f, b3f, wf_p, bf_p)
    return out[:B, :num_classes]


def init_params(key, channels, num_classes):
    """Deterministic synthetic params. Conv taps stored as (3, Cin, Cout)."""
    ks = jax.random.split(key, 8)

    def conv_w(k, cin, cout):
        scale = 1.0 / jnp.sqrt(cin * KSIZE)
        return scale * jax.random.normal(k, (KSIZE, cin, cout), jnp.float32)

    w1 = conv_w(ks[0], channels, 32); b1 = 0.01 * jax.random.normal(ks[1], (1, 32))
    w2 = conv_w(ks[2], 32, 64);       b2 = 0.01 * jax.random.normal(ks[3], (1, 64))
    w3 = conv_w(ks[4], 64, 32);       b3 = 0.01 * jax.random.normal(ks[5], (1, 32))
    wf = (1.0 / jnp.sqrt(32.0)) * jax.random.normal(ks[6], (32, num_classes))
    bf = 0.01 * jax.random.normal(ks[7], (1, num_classes))
    return (w1, b1, w2, b2, w3, b3, wf, bf)


def cnn_reference(x_ncl, params):
    """Pure-JAX f32 reference matching the PyTorch forward semantics."""
    w1, b1, w2, b2, w3, b3, wf, bf = params

    def conv_relu(x_blc, w, b):
        out_len = x_blc.shape[1] - (KSIZE - 1)
        acc = sum(jnp.einsum("blc,cd->bld", x_blc[:, k:k + out_len, :], w[k])
                  for k in range(KSIZE))
        return jax.nn.relu(acc + b[None])

    h = jnp.transpose(x_ncl, (0, 2, 1))
    h = conv_relu(h, w1, b1)
    h = conv_relu(h, w2, b2)
    h = conv_relu(h, w3, b3)
    pooled = jnp.mean(h, axis=1)                    # (B, 32) global avg pool
    return pooled @ wf + bf


if __name__ == "__main__":
    B, C, L, NUM_CLASSES = 2, 4, 16, 10
    key = jax.random.PRNGKey(0)
    kx, kp = jax.random.split(key)
    x = jax.random.normal(kx, (B, C, L), jnp.float32)      # PyTorch NCL input
    params = init_params(kp, C, NUM_CLASSES)

    out = cnn_forward(x, params)
    out = jax.block_until_ready(out)

    ref = cnn_reference(x, params)
    assert out.shape == (B, NUM_CLASSES)
    # bf16 matmul operands with f32 accumulation -> slightly looser tolerance.
    assert jnp.allclose(out, ref, atol=3e-2, rtol=3e-2), float(jnp.max(jnp.abs(out - ref)))
    print("KERNEL_OK")
</pallas_src>

<mosaic_0001>
module attributes {stable_mosaic.version = 11 : i64} {
  func.func @cnn_kernel(%arg0: i32, %arg1: memref<128x12xbf16, #tpu.memory_space<vmem>>, %arg2: memref<12x32xbf16, #tpu.memory_space<vmem>>, %arg3: memref<1x32xf32, #tpu.memory_space<vmem>>, %arg4: memref<96x64xbf16, #tpu.memory_space<vmem>>, %arg5: memref<1x64xf32, #tpu.memory_space<vmem>>, %arg6: memref<192x32xbf16, #tpu.memory_space<vmem>>, %arg7: memref<1x32xf32, #tpu.memory_space<vmem>>, %arg8: memref<32x128xf32, #tpu.memory_space<vmem>>, %arg9: memref<1x128xf32, #tpu.memory_space<vmem>>, %arg10: memref<8x128xf32, #tpu.memory_space<vmem>>) attributes {dimension_semantics = [#tpu.dimension_semantics<parallel>], iteration_bounds = array<i64: 1>, scalar_prefetch = 0 : i64, scratch_operands = 0 : i64, tpu.core_type = #tpu.core_type<tc>, window_params = [{transform_indices = @transform_0, window_bounds = array<i64: 128, 12>}, {pipeline_mode = #tpu.pipeline_mode<synchronous>, transform_indices = @transform_1, window_bounds = array<i64: 12, 32>}, {pipeline_mode = #tpu.pipeline_mode<synchronous>, transform_indices = @transform_2, window_bounds = array<i64: 1, 32>}, {pipeline_mode = #tpu.pipeline_mode<synchronous>, transform_indices = @transform_3, window_bounds = array<i64: 96, 64>}, {pipeline_mode = #tpu.pipeline_mode<synchronous>, transform_indices = @transform_4, window_bounds = array<i64: 1, 64>}, {pipeline_mode = #tpu.pipeline_mode<synchronous>, transform_indices = @transform_5, window_bounds = array<i64: 192, 32>}, {pipeline_mode = #tpu.pipeline_mode<synchronous>, transform_indices = @transform_6, window_bounds = array<i64: 1, 32>}, {pipeline_mode = #tpu.pipeline_mode<synchronous>, transform_indices = @transform_7, window_bounds = array<i64: 32, 128>}, {pipeline_mode = #tpu.pipeline_mode<synchronous>, transform_indices = @transform_8, window_bounds = array<i64: 1, 128>}, {transform_indices = @transform_9, window_bounds = array<i64: 8, 128>}]} {
    %c0 = arith.constant 0 : index
    %c0_0 = arith.constant 0 : index
    %0 = vector.load %arg1[%c0, %c0_0] : memref<128x12xbf16, #tpu.memory_space<vmem>>, vector<128x12xbf16>
    %c0_1 = arith.constant 0 : index
    %c0_2 = arith.constant 0 : index
    %1 = vector.load %arg2[%c0_1, %c0_2] : memref<12x32xbf16, #tpu.memory_space<vmem>>, vector<12x32xbf16>
    %cst = arith.constant dense<0.000000e+00> : vector<128x32xf32>
    %2 = tpu.matmul %0, %1, %cst {dimension_numbers = #tpu.dot_dimension_numbers<[1], [0], [0], [1], [0, 0, 1, 1], [], []>} : vector<128x12xbf16>, vector<12x32xbf16>, vector<128x32xf32> -> vector<128x32xf32>
    %c0_3 = arith.constant 0 : index
    %c0_4 = arith.constant 0 : index
    %3 = vector.load %arg3[%c0_3, %c0_4] : memref<1x32xf32, #tpu.memory_space<vmem>>, vector<1x32xf32>
    %4 = vector.broadcast %3 : vector<1x32xf32> to vector<128x32xf32>
    %5 = arith.addf %2, %4 : vector<128x32xf32>
    %cst_5 = arith.constant 0.000000e+00 : f32
    %6 = vector.broadcast %cst_5 : f32 to vector<128x32xf32>
    %7 = arith.maximumf %5, %6 : vector<128x32xf32>
    %c127_i32 = arith.constant 127 : i32
    %8 = tpu.dynamic_rotate %7 by %c127_i32 dim 0 : vector<128x32xf32>, i32 -> vector<128x32xf32>
    %c126_i32 = arith.constant 126 : i32
    %9 = tpu.dynamic_rotate %7 by %c126_i32 dim 0 : vector<128x32xf32>, i32 -> vector<128x32xf32>
    %10 = tpu.concatenate %7, %8, %9 in 1 : vector<128x32xf32>, vector<128x32xf32>, vector<128x32xf32> -> vector<128x96xf32>
    %11 = arith.truncf %10 : vector<128x96xf32> to vector<128x96xbf16>
    %c0_6 = arith.constant 0 : index
    %c0_7 = arith.constant 0 : index
    %12 = vector.load %arg4[%c0_6, %c0_7] : memref<96x64xbf16, #tpu.memory_space<vmem>>, vector<96x64xbf16>
    %cst_8 = arith.constant dense<0.000000e+00> : vector<128x64xf32>
    %13 = tpu.matmul %11, %12, %cst_8 {dimension_numbers = #tpu.dot_dimension_numbers<[1], [0], [0], [1], [0, 0, 1, 1], [], []>} : vector<128x96xbf16>, vector<96x64xbf16>, vector<128x64xf32> -> vector<128x64xf32>
    %c0_9 = arith.constant 0 : index
    %c0_10 = arith.constant 0 : index
    %14 = vector.load %arg5[%c0_9, %c0_10] : memref<1x64xf32, #tpu.memory_space<vmem>>, vector<1x64xf32>
    %15 = vector.broadcast %14 : vector<1x64xf32> to vector<128x64xf32>
    %16 = arith.addf %13, %15 : vector<128x64xf32>
    %cst_11 = arith.constant 0.000000e+00 : f32
    %17 = vector.broadcast %cst_11 : f32 to vector<128x64xf32>
    %18 = arith.maximumf %16, %17 : vector<128x64xf32>
    %c127_i32_12 = arith.constant 127 : i32
    %19 = tpu.dynamic_rotate %18 by %c127_i32_12 dim 0 : vector<128x64xf32>, i32 -> vector<128x64xf32>
    %c126_i32_13 = arith.constant 126 : i32
    %20 = tpu.dynamic_rotate %18 by %c126_i32_13 dim 0 : vector<128x64xf32>, i32 -> vector<128x64xf32>
    %21 = tpu.concatenate %18, %19, %20 in 1 : vector<128x64xf32>, vector<128x64xf32>, vector<128x64xf32> -> vector<128x192xf32>
    %22 = arith.truncf %21 : vector<128x192xf32> to vector<128x192xbf16>
    %c0_14 = arith.constant 0 : index
    %c0_15 = arith.constant 0 : index
    %23 = vector.load %arg6[%c0_14, %c0_15] : memref<192x32xbf16, #tpu.memory_space<vmem>>, vector<192x32xbf16>
    %cst_16 = arith.constant dense<0.000000e+00> : vector<128x32xf32>
    %24 = tpu.matmul %22, %23, %cst_16 {dimension_numbers = #tpu.dot_dimension_numbers<[1], [0], [0], [1], [0, 0, 1, 1], [], []>} : vector<128x192xbf16>, vector<192x32xbf16>, vector<128x32xf32> -> vector<128x32xf32>
    %c0_17 = arith.constant 0 : index
    %c0_18 = arith.constant 0 : index
    %25 = vector.load %arg7[%c0_17, %c0_18] : memref<1x32xf32, #tpu.memory_space<vmem>>, vector<1x32xf32>
    %26 = vector.broadcast %25 : vector<1x32xf32> to vector<128x32xf32>
    %27 = arith.addf %24, %26 : vector<128x32xf32>
    %cst_19 = arith.constant 0.000000e+00 : f32
    %28 = vector.broadcast %cst_19 : f32 to vector<128x32xf32>
    %29 = arith.maximumf %27, %28 : vector<128x32xf32>
    %30 = vector.shape_cast %29 : vector<128x32xf32> to vector<8x16x32xf32>
    %31 = vector.extract_strided_slice %30 {offsets = [0, 0, 0], sizes = [8, 10, 32], strides = [1, 1, 1]} : vector<8x16x32xf32> to vector<8x10x32xf32>
    %cst_20 = arith.constant dense<0.000000e+00> : vector<8x32xf32>
    %32 = vector.multi_reduction <add>, %31, %cst_20 [1] : vector<8x10x32xf32> to vector<8x32xf32>
    %cst_21 = arith.constant 1.000000e-01 : f32
    %33 = vector.broadcast %cst_21 : f32 to vector<8x32xf32>
    %34 = arith.mulf %32, %33 : vector<8x32xf32>
    %c0_22 = arith.constant 0 : index
    %c0_23 = arith.constant 0 : index
    %35 = vector.load %arg8[%c0_22, %c0_23] : memref<32x128xf32, #tpu.memory_space<vmem>>, vector<32x128xf32>
    %cst_24 = arith.constant dense<0.000000e+00> : vector<8x128xf32>
    %36 = tpu.matmul %34, %35, %cst_24 {dimension_numbers = #tpu.dot_dimension_numbers<[1], [0], [0], [1], [0, 0, 1, 1], [], []>} : vector<8x32xf32>, vector<32x128xf32>, vector<8x128xf32> -> vector<8x128xf32>
    %c0_25 = arith.constant 0 : index
    %c0_26 = arith.constant 0 : index
    %37 = vector.load %arg9[%c0_25, %c0_26] : memref<1x128xf32, #tpu.memory_space<vmem>>, vector<1x128xf32>
    %38 = vector.broadcast %37 : vector<1x128xf32> to vector<8x128xf32>
    %39 = arith.addf %36, %38 : vector<8x128xf32>
    %c0_27 = arith.constant 0 : index
    %c0_28 = arith.constant 0 : index
    %40 = vector.load %arg10[%c0_27, %c0_28] : memref<8x128xf32, #tpu.memory_space<vmem>>, vector<8x128xf32>
    tpu.vector_store %arg10[%c0_27, %c0_28], %39 {strides = array<i32>} : memref<8x128xf32, #tpu.memory_space<vmem>>, vector<8x128xf32>,
    return
  }
  func.func @transform_0(%arg0: i32) -> (i32, i32) {
    %c0_i32 = arith.constant 0 : i32
    %c0_i32_0 = arith.constant 0 : i32
    return %arg0, %c0_i32 : i32, i32
  }
  func.func @transform_1(%arg0: i32) -> (i32, i32) {
    %c0_i32 = arith.constant 0 : i32
    %c0_i32_0 = arith.constant 0 : i32
    %c0_i32_1 = arith.constant 0 : i32
    return %c0_i32, %c0_i32_0 : i32, i32
  }
  func.func @transform_2(%arg0: i32) -> (i32, i32) {
    %c0_i32 = arith.constant 0 : i32
    %c0_i32_0 = arith.constant 0 : i32
    %c0_i32_1 = arith.constant 0 : i32
    return %c0_i32, %c0_i32_0 : i32, i32
  }
  func.func @transform_3(%arg0: i32) -> (i32, i32) {
    %c0_i32 = arith.constant 0 : i32
    %c0_i32_0 = arith.constant 0 : i32
    %c0_i32_1 = arith.constant 0 : i32
    return %c0_i32, %c0_i32_0 : i32, i32
  }
  func.func @transform_4(%arg0: i32) -> (i32, i32) {
    %c0_i32 = arith.constant 0 : i32
    %c0_i32_0 = arith.constant 0 : i32
    %c0_i32_1 = arith.constant 0 : i32
    return %c0_i32, %c0_i32_0 : i32, i32
  }
  func.func @transform_5(%arg0: i32) -> (i32, i32) {
    %c0_i32 = arith.constant 0 : i32
    %c0_i32_0 = arith.constant 0 : i32
    %c0_i32_1 = arith.constant 0 : i32
    return %c0_i32, %c0_i32_0 : i32, i32
  }
  func.func @transform_6(%arg0: i32) -> (i32, i32) {
    %c0_i32 = arith.constant 0 : i32
    %c0_i32_0 = arith.constant 0 : i32
    %c0_i32_1 = arith.constant 0 : i32
    return %c0_i32, %c0_i32_0 : i32, i32
  }
  func.func @transform_7(%arg0: i32) -> (i32, i32) {
    %c0_i32 = arith.constant 0 : i32
    %c0_i32_0 = arith.constant 0 : i32
    %c0_i32_1 = arith.constant 0 : i32
    return %c0_i32, %c0_i32_0 : i32, i32
  }
  func.func @transform_8(%arg0: i32) -> (i32, i32) {
    %c0_i32 = arith.constant 0 : i32
    %c0_i32_0 = arith.constant 0 : i32
    %c0_i32_1 = arith.constant 0 : i32
    return %c0_i32, %c0_i32_0 : i32, i32
  }
  func.func @transform_9(%arg0: i32) -> (i32, i32) {
    %c0_i32 = arith.constant 0 : i32
    %c0_i32_0 = arith.constant 0 : i32
    return %arg0, %c0_i32 : i32, i32
  }
}

</mosaic_0001>

<bundles_post_ra>
// kernel: tpu_custom_call.1
= control target key start
LH: loop header
LB: loop body
LE: loop exit
PB: predicated region body
PF: predicated region fallthrough
CT: control target
= control target key end

     0   :  { %vm129_vm0 = vcmask 1045504   ;;  %vm104_vm1 = vcmask 97280   ;;  %s2294_s0 = inlined_call_operand.vmem [shape: bf16[128,12], index: 0, kind: input, shape index: {}]   ;;  %s2295_s1 = inlined_call_operand.vmem [shape: bf16[12,32], index: 1, kind: input, shape index: {}]   ;;  %s2296_s2 = inlined_call_operand.vmem [shape: f32[1,32], index: 2, kind: input, shape index: {}]   ;;  %s2297_s3 = inlined_call_operand.vmem [shape: bf16[96,64], index: 3, kind: input, shape index: {}]   ;;  %s2298_s4 = inlined_call_operand.vmem [shape: f32[1,64], index: 4, kind: input, shape index: {}]   ;;  %s2299_s5 = inlined_call_operand.vmem [shape: bf16[192,32], index: 5, kind: input, shape index: {}]   ;;  %s2300_s6 = inlined_call_operand.vmem [shape: f32[1,32], index: 6, kind: input, shape index: {}]   ;;  %s2301_s7 = inlined_call_operand.vmem [shape: f32[32,128], index: 7, kind: input, shape index: {}]   ;;  %s2302_s8 = inlined_call_operand.vmem [shape: f32[1,128], index: 8, kind: input, shape index: {}]   ;;  %s2303_s9 = inlined_call_operand.hbm [shape: f32[8,128], index: 9, kind: output, shape index: {}]  }
   0x1   :  { %v1577_v0 = vld [vmem:[%s2295_s1] sm:$0x3f]   ;;  %v1579_v3 = vld [vmem:[%s2294_s0 + $0x8] sm:$0xff]   ;;  %v1580_v4 = vld [vmem:[%s2294_s0 + $0x10] sm:$0xff]  }
   0x2   :  { %v1578_v1 = vld [vmem:[%s2294_s0] sm:$0xff]   ;;  %1449 = vmatprep.subr.msk.bf16.mxu0 %vm129_vm0, %v1577_v0  ;;  %v131_v2 = vsel %vm129_vm0, %v1577_v0, 0  ;;  %v1581_v5 = vld [vmem:[%s2294_s0 + $0x18] sm:$0xff]   ;;  %v1583_v7 = vld [vmem:[%s2294_s0 + $0x28] sm:$0xff]  }
   0x3   :  { %1363 = vmatpush3.bf16.msra.mxu0 %v131_v2  ;;  %1364 = vmatprep.mubr.msk.bf16.mxu0 %vm104_vm1, %v1578_v1  ;;  %v1582_v6 = vld [vmem:[%s2294_s0 + $0x20] sm:$0xff]   ;;  %v1584_v8 = vld [vmem:[%s2294_s0 + $0x30] sm:$0xff]  }
   0x6   :  { %1365 = vmatmul.mubr.msk.bf16.vlgmr.msra.gmra.mrb[0].mxu0 %vm104_vm1, %v1579_v3 }
   0x7   :  { %1368 = vmatprep.mubr.msk.bf16.mxu0 %vm104_vm1, %v1580_v4 }
   0xe   :  { %1369 = vmatmul.mubr.msk.bf16.gmra.mrb[4].mxu0 %vm104_vm1, %v1581_v5 }
   0xf   :  { %1372 = vmatprep.mubr.msk.bf16.mxu0 %vm104_vm1, %v1582_v6 }
  0x10   :  { %14 = vsyncpa [#allocation3], 0  ;;  %v1585_v9 = vld [vmem:[%s2294_s0 + $0x38] sm:$0xff]   ;;  %v1586_v10 = vld [vmem:[%s2297_s3] sm:$0xff]   ;;  %v262_v14 = vlaneseq  ;;  %s1629_s1 = smov 32   ;;  %vm442_vm4 = vcmask 261120  }
  0x11   :  { %v1587_v11 = vld [vmem:[%s2297_s3 + $0x8] sm:$0xff]   ;;  %1380 = vmatprep.subr.bf16.mxu1 %v1586_v10  ;;  %v1588_v12 = vld [vmem:[%s2297_s3 + $0x10] sm:$0xff]   ;;  %v1732_v13 = vld [vmem:[%s2296_s2] ss:$0 sm:$0xff]  ;;  %vm459_vm5 = vcmask 523264   ;;  %vm539_vm6 = vcmask 785408  }
  0x12   :  { %1381 = vmatpush3.bf16.msra.mxu1 %v1586_v10  ;;  %v1589_v18 = vld [vmem:[%s2297_s3 + $0x18] sm:$0xff]   ;;  %v1590_v19 = vld [vmem:[%s2297_s3 + $0x20] sm:$0xff]   ;;  %v1745_v25 = vshrl.u32 %v262_v14, 7  ;;  %v1591_v36 = vld [vmem:[%s2297_s3 + $0x28] sm:$0xff]   ;;  %s1628_s3 = smov 64   ;;  %vm1632_vm7 = vmmov 0  }
  0x13   :  { %1382 = vmatprep.subr.bf16.mxu1 %v1587_v11  ;;  %vm1078_vm8 = vcmask 254976   ;;  %vm1177_vm9 = vcmask 1041409   ;;  %vm1179_vm10 = vcmask 1042434   ;;  %vm1181_vm11 = vcmask 1043459   ;;  %s1634_s26 = smov [#allocation2]  }
  0x14   :  { %vm297_vm2 = vcmp.lt.s32.totalorder %v1745_v25, 6  ;;  %vm264_vm3 = vcmp.lt.s32.totalorder %v1745_v25, 7  ;;  %v1158_v25 = vld [vmem:[%s2301_s7] sm:$0xff]  ;;  %vm1183_vm12 = vcmask 1044484   ;;  %vm1185_vm13 = vcmask 1045509   ;;  %s1270_s27 = sshll.u32 %s1634_s26, 4  ;;  %s1271_s27 = int_to_ptr.vmem [resolvable:$true] %s1270_s27 }
  0x15   :  { %vm1187_vm14 = vcmask 1046534   ;;  %vm1189_vm15 = vcmask 1047559   ;;  %s1604_s28 = scalar_lea.vmem %s1271_s27, 128  ;;  %p1609_p1 = scmp.lt.s32.totalorder %s1271_s27, %s1271_s27 }
  0x16   :  { %1373 = vmatmul.mubr.msk.bf16.gmra.mrb[8].mxu0 %vm104_vm1, %v1583_v7  ;;  %1383 = vmatpush3.bf16.msra.mxu1 %v1587_v11  ;;  %p1605_p0 = scmp.ne.s32.totalorder %s1271_s27, %s1604_s28  ;;  %p1610_p2 = scmp.lt.s32.totalorder %s1604_s28, %s1604_s28 }
  0x17   :  { %1376 = vmatprep.mubr.msk.bf16.mxu0 %vm104_vm1, %v1584_v8  ;;  %1384 = vmatprep.subr.bf16.mxu1 %v1588_v12 }
  0x18   :  { %p1611_p3 = por %p1610_p2, %p1609_p1 }
  0x1a   :  { %1385 = vmatpush3.bf16.msra.mxu1 %v1588_v12  ;;  %p1612_p4 = pnand %p1611_p3, %p1605_p0 }
  0x1b   :  { %1386 = vmatprep.subr.bf16.mxu1 %v1589_v18 }
  0x1e   :  { %1377 = vmatmul.mubr.msk.bf16.gmra.mrb[12].mxu0 %vm104_vm1, %v1585_v9  ;;  %1387 = vmatpush3.bf16.msra.mxu1 %v1589_v18 }
  0x1f   :  { %1388 = vmatprep.subr.bf16.mxu1 %v1590_v19 }
  0x22   :  { %1389 = vmatpush3.bf16.msra.mxu1 %v1590_v19 }
  0x23   :  { %1390 = vmatprep.subr.bf16.mxu1 %v1591_v36 }
  0x26   :  { %1391 = vmatpush3.bf16.msra.mxu1 %v1591_v36 }
  0xd9   :  { %v1366_v15 = vpop.f32.mrb[0].mxu0 }
  0xda   :  { %v176_v16 = vadd.f32 %v1366_v15, %v1732_v13  ;;  %v167_v17 = vpop.f32.mrb[1].mxu0 }
  0xdb   :  { %v168_v20 = vadd.f32 %v1732_v13, %v167_v17  ;;  %v1367_v21 = vpop.f32.mrb[2].mxu0 }
  0xdc   :  { %v1742_v22 = vmax.f32 %v176_v16, 0.0  ;;  %v179_v23 = vadd.f32 %v1367_v21, %v1732_v13  ;;  %v170_v24 = vpop.f32.mrb[3].mxu0 }
  0xdd   :  { %v1747_v26 = vmax.f32 %v168_v20, 0.0  ;;  %v171_v27 = vadd.f32 %v1732_v13, %v170_v24 }
  0xde   :  { %v1750_v28 = vmax.f32 %v179_v23, 0.0  ;;  %v248_v30 = vrot.slane %v1742_v22, 1  ;;  %v283_v31 = vrot.slane %v1742_v22, 2 }
  0xdf   :  { %v1752_v29 = vmax.f32 %v171_v27, 0.0  ;;  %v281_v32 = vrot.slane %v1747_v26, 2  ;;  %v246_v37 = vrot.slane %v1747_v26, 1 }
  0xe0   :  { %v249_v38 = vrot.slane %v1750_v28, 1  ;;  %v284_v46 = vrot.slane %v1750_v28, 2 }
  0xe1   :  { %v247_v33 = vrot.slane %v1752_v29, 1  ;;  %v282_v34 = vrot.slane %v1752_v29, 2  ;;  %v1370_v35 = vpop.f32.mrb[4].mxu0 }
  0xe2   :  { %v192_v39 = vadd.f32 %v1370_v35, %v1732_v13  ;;  %v183_v40 = vpop.f32.mrb[5].mxu0  ;;  %v310_v59 = vsel %vm297_vm2, %v283_v31, %v284_v46  ;;  %v277_v60 = vsel %vm264_vm3, %v248_v30, %v249_v38 }
  0xe3   :  { %v184_v41 = vadd.f32 %v1732_v13, %v183_v40  ;;  %v1371_v42 = vpop.f32.mrb[6].mxu0  ;;  %v311_v43 = vsel %vm297_vm2, %v282_v34, %v283_v31  ;;  %v312_v44 = vsel %vm297_vm2, %v281_v32, %v282_v34  ;;  %v278_v45 = vsel %vm264_vm3, %v247_v33, %v248_v30 }
  0xe4   :  { %v1777_v47 = vmax.f32 %v192_v39, 0.0  ;;  %v186_v48 = vpop.f32.mrb[7].mxu0  ;;  %v1467_v49 = vpack.i.bf16 %v311_v43, %v312_v44  ;;  %v279_v50 = vsel %vm264_vm3, %v246_v37, %v247_v33  ;;  %v195_v52 = vadd.f32 %v1371_v42, %v1732_v13 }
  0xe5   :  { %v1783_v51 = vmax.f32 %v184_v41, 0.0  ;;  %v187_v53 = vadd.f32 %v1732_v13, %v186_v48  ;;  %v1457_v54 = vpack.i.bf16 %v278_v45, %v279_v50 }
  0xe6   :  { %1468 = vrot.lane.b32.xlu1 %v1467_v49, %s1628_s3  ;;  %v252_v58 = vrot.slane %v1777_v47, 1  ;;  %v1798_v61 = vmax.f32 %v195_v52, 0.0  ;;  %v287_v11 = vrot.slane %v1777_v47, 2 }
  0xe7   :  { %v250_v55 = vrot.slane %v1783_v51, 1  ;;  %v285_v56 = vrot.slane %v1783_v51, 2  ;;  %v1790_v57 = vmax.f32 %v187_v53, 0.0  ;;  %1458 = vrot.lane.b32.xlu0 %v1457_v54, %s1629_s1 }
  0xe8   :  { %v253_v15 = vrot.slane %v1798_v61, 1  ;;  %v288_v30 = vrot.slane %v1798_v61, 2 }
  0xe9   :  { %v251_v62 = vrot.slane %v1790_v57, 1  ;;  %v1374_v63 = vpop.f32.mrb[8].mxu0  ;;  %v309_v0 = vsel %vm297_vm2, %v284_v46, %v285_v56  ;;  %v276_v1 = vsel %vm264_vm3, %v249_v38, %v250_v55  ;;  %v286_v2 = vrot.slane %v1790_v57, 2 }
  0xea   :  { %v208_v3 = vadd.f32 %v1374_v63, %v1732_v13  ;;  %v199_v4 = vpop.f32.mrb[9].mxu0  ;;  %v1472_v5 = vpack.i.bf16 %v309_v0, %v310_v59  ;;  %v1462_v6 = vpack.i.bf16 %v276_v1, %v277_v60  ;;  %v273_v38 = vsel %vm264_vm3, %v252_v58, %v253_v15 }
  0xeb   :  { %v200_v7 = vadd.f32 %v1732_v13, %v199_v4  ;;  %v1375_v8 = vpop.f32.mrb[10].mxu0  ;;  %v274_v9 = vsel %vm264_vm3, %v251_v62, %v252_v58  ;;  %v275_v10 = vsel %vm264_vm3, %v250_v55, %v251_v62  ;;  %v307_v20 = vsel %vm297_vm2, %v286_v2, %v287_v11 }
  0xec   :  { %v211_v12 = vadd.f32 %v1375_v8, %v1732_v13  ;;  %v202_v14 = vpop.f32.mrb[11].mxu0  ;;  %1473 = vrot.lane.b32.xlu1 %v1472_v5, %s1628_s3  ;;  %1463 = vrot.lane.b32.xlu0 %v1462_v6, %s1629_s1  ;;  %v1817_v16 = vmax.f32 %v208_v3, 0.0  ;;  %v1477_v19 = vpack.i.bf16 %v274_v9, %v275_v10  ;;  %v308_v27 = vsel %vm297_vm2, %v285_v56, %v286_v2 }
  0xed   :  { %v1819_v17 = vmax.f32 %v200_v7, 0.0  ;;  %v203_v18 = vadd.f32 %v1732_v13, %v202_v14  ;;  %v1482_v43 = vpack.i.bf16 %v307_v20, %v308_v27  ;;  %v306_v59 = vsel %vm297_vm2, %v287_v11, %v288_v30 }
  0xee   :  { %v1831_v31 = vmax.f32 %v211_v12, 0.0  ;;  %v256_v33 = vrot.slane %v1817_v16, 1  ;;  %v291_v50 = vrot.slane %v1817_v16, 2 }
  0xef   :  { %v254_v21 = vrot.slane %v1819_v17, 1  ;;  %v289_v23 = vrot.slane %v1819_v17, 2  ;;  %v1826_v24 = vmax.f32 %v203_v18, 0.0 }
  0xf0   :  { %1478 = vrot.lane.b32.xlu0 %v1477_v19, %s1629_s1  ;;  %v257_v52 = vrot.slane %v1831_v31, 1 }
  0xf1   :  { %v255_v34 = vrot.slane %v1826_v24, 1  ;;  %v1378_v35 = vpop.f32.mrb[12].mxu0  ;;  %v272_v36 = vsel %vm264_vm3, %v253_v15, %v254_v21  ;;  %v290_v39 = vrot.slane %v1826_v24, 2  ;;  %v305_v46 = vsel %vm297_vm2, %v288_v30, %v289_v23 }
  0xf2   :  { %v224_v40 = vadd.f32 %v1378_v35, %v1732_v13  ;;  %v215_v41 = vpop.f32.mrb[13].mxu0  ;;  %v1487_v42 = vpack.i.bf16 %v272_v36, %v273_v38  ;;  %v1492_v60 = vpack.i.bf16 %v305_v46, %v306_v59  ;;  %v269_v5 = vsel %vm264_vm3, %v256_v33, %v257_v52 }
  0xf3   :  { %v216_v44 = vadd.f32 %v1732_v13, %v215_v41  ;;  %v1379_v45 = vpop.f32.mrb[14].mxu0  ;;  %v270_v48 = vsel %vm264_vm3, %v255_v34, %v256_v33  ;;  %v271_v49 = vsel %vm264_vm3, %v254_v21, %v255_v34  ;;  %v303_v63 = vsel %vm297_vm2, %v290_v39, %v291_v50 }
  0xf4   :  { %v227_v53 = vadd.f32 %v1379_v45, %v1732_v13  ;;  %1488 = vrot.lane.b32.xlu1 %v1487_v42, %s1629_s1  ;;  %1483 = vrot.lane.b32.xlu0 %v1482_v43, %s1628_s3  ;;  %v218_v54 = vpop.f32.mrb[15].mxu0  ;;  %v1854_v55 = vmax.f32 %v224_v40, 0.0  ;;  %v1497_v62 = vpack.i.bf16 %v270_v48, %v271_v49  ;;  %v304_v0 = vsel %vm297_vm2, %v289_v23, %v290_v39 }
  0xf5   :  { %v1856_v56 = vmax.f32 %v216_v44, 0.0  ;;  %v219_v58 = vadd.f32 %v1732_v13, %v218_v54  ;;  %v292_v13 = vrot.slane %v1831_v31, 2  ;;  %v1502_v12 = vpack.i.bf16 %v303_v63, %v304_v0 }
  0xf6   :  { %v1867_v3 = vmax.f32 %v227_v53, 0.0  ;;  %v260_v6 = vrot.slane %v1854_v55, 1  ;;  %v295_v10 = vrot.slane %v1854_v55, 2 }
  0xf7   :  { %v258_v1 = vrot.slane %v1856_v56, 1  ;;  %v293_v2 = vrot.slane %v1856_v56, 2  ;;  %v1869_v4 = vmax.f32 %v219_v58, 0.0  ;;  %v302_v21 = vsel %vm297_vm2, %v291_v50, %v292_v13 }
  0xf8   :  { %1493 = vrot.lane.b32.xlu1 %v1492_v60, %s1628_s3  ;;  %1498 = vrot.lane.b32.xlu0 %v1497_v62, %s1629_s1  ;;  %v261_v14 = vrot.slane %v1867_v3, 1  ;;  %v296_v33 = vrot.slane %v1867_v3, 2 }
  0xf9   :  { %v259_v7 = vrot.slane %v1869_v4, 1  ;;  %v294_v8 = vrot.slane %v1869_v4, 2  ;;  %v268_v9 = vsel %vm264_vm3, %v257_v52, %v258_v1  ;;  %v301_v15 = vsel %vm297_vm2, %v292_v13, %v293_v2 }
  0xfa   :  { %v1507_v11 = vpack.i.bf16 %v268_v9, %v269_v5  ;;  %v1512_v30 = vpack.i.bf16 %v301_v15, %v302_v21  ;;  %v265_v34 = vsel %vm264_vm3, %v260_v6, %v261_v14  ;;  %v280_v35 = vsel %vm264_vm3, %v261_v14, %v246_v37 }
  0xfb   :  { %v266_v18 = vsel %vm264_vm3, %v259_v7, %v260_v6  ;;  %v267_v19 = vsel %vm264_vm3, %v258_v1, %v259_v7  ;;  %v299_v23 = vsel %vm297_vm2, %v294_v8, %v295_v10  ;;  %v300_v27 = vsel %vm297_vm2, %v293_v2, %v294_v8 }
  0xfc   :  { %1508 = vrot.lane.b32.xlu1 %v1507_v11, %s1629_s1  ;;  %1503 = vrot.lane.b32.xlu0 %v1502_v12, %s1628_s3  ;;  %v1522_v20 = vpack.i.bf16 %v266_v18, %v267_v19  ;;  %v1527_v36 = vpack.i.bf16 %v299_v23, %v300_v27  ;;  %v1517_v38 = vpack.i.bf16 %v280_v35, %v265_v34 }
  0xfd   :  { %v298_v39 = vsel %vm297_vm2, %v295_v10, %v296_v33  ;;  %v313_v40 = vsel %vm297_vm2, %v296_v33, %v281_v32 }
  0xfe   :  { %v1532_v41 = vpack.i.bf16 %v313_v40, %v298_v39 }
 0x100   :  { %1513 = vrot.lane.b32.xlu1 %v1512_v30, %s1628_s3  ;;  %1523 = vrot.lane.b32.xlu0 %v1522_v20, %s1629_s1 }
 0x104   :  { %1518 = vrot.lane.b32.xlu1 %v1517_v38, %s1629_s1  ;;  %1528 = vrot.lane.b32.xlu0 %v1527_v36, %s1628_s3 }
 0x108   :  { %1533 = vrot.lane.b32.xlu1 %v1532_v41, %s1628_s3 }
 0x158   :  { %v1469_v37 = vpop.permute.xlu1 %1468 }
 0x159   :  { %v1471_v42 = vunpack.i.h.bf16 %v1469_v37  ;;  %v1470_v43 = vunpack.i.l.bf16 %v1469_v37  ;;  %v1459_v44 = vpop.permute.xlu0 %1458 }
 0x15a   :  { %v1461_v45 = vunpack.i.h.bf16 %v1459_v44  ;;  %v1460_v46 = vunpack.i.l.bf16 %v1459_v44 }
 0x15c   :  { %v443_v48 = vsel %vm442_vm4, %v1747_v26, %v1460_v46  ;;  %v444_v32 = vsel %vm442_vm4, %v1752_v29, %v1461_v45 }
 0x15d   :  { %v460_v49 = vsel %vm459_vm5, %v443_v48, %v1470_v43  ;;  %v461_v50 = vsel %vm459_vm5, %v444_v32, %v1471_v42 }
 0x15e   :  { %v1474_v52 = vpop.permute.xlu1 %1473  ;;  %v1464_v53 = vpop.permute.xlu0 %1463  ;;  %v476_v54 = vpack.c.bf16 %v461_v50, %v460_v49 }
 0x15f   :  { %v1476_v58 = vunpack.i.h.bf16 %v1474_v52  ;;  %v1475_v59 = vunpack.i.l.bf16 %v1474_v52  ;;  %v1466_v60 = vunpack.i.h.bf16 %v1464_v53  ;;  %v1465_v62 = vunpack.i.l.bf16 %v1464_v53 }
 0x160   :  { %1392 = vmatprep.mubr.msk.bf16.mxu1 %vm539_vm6, %v476_v54 }
 0x161   :  { %v446_v26 = vsel %vm442_vm4, %v1750_v28, %v1466_v60  ;;  %v445_v29 = vsel %vm442_vm4, %v1742_v22, %v1465_v62 }
 0x162   :  { %v1479_v63 = vpop.permute.xlu0 %1478  ;;  %v462_v0 = vsel %vm459_vm5, %v445_v29, %v1475_v59  ;;  %v463_v1 = vsel %vm459_vm5, %v446_v26, %v1476_v58 }
 0x163   :  { %v477_v2 = vpack.c.bf16 %v463_v1, %v462_v0  ;;  %v1481_v13 = vunpack.i.h.bf16 %v1479_v63  ;;  %v1480_v5 = vunpack.i.l.bf16 %v1479_v63 }
 0x165   :  { %1393 = vmatmul.mubr.msk.bf16.vlgmr.msra.gmra.mrb[0].mxu1 %vm539_vm6, %v477_v2  ;;  %v448_v28 = vsel %vm442_vm4, %v1790_v57, %v1481_v13  ;;  %v447_v22 = vsel %vm442_vm4, %v1783_v51, %v1480_v5 }
 0x166   :  { %v1489_v6 = vpop.permute.xlu1 %1488  ;;  %v1484_v7 = vpop.permute.xlu0 %1483 }
 0x167   :  { %v1486_v8 = vunpack.i.h.bf16 %v1484_v7  ;;  %v1485_v9 = vunpack.i.l.bf16 %v1484_v7  ;;  %v1491_v10 = vunpack.i.h.bf16 %v1489_v6  ;;  %v1490_v11 = vunpack.i.l.bf16 %v1489_v6 }
 0x169   :  { %v464_v12 = vsel %vm459_vm5, %v447_v22, %v1485_v9  ;;  %v465_v14 = vsel %vm459_vm5, %v448_v28, %v1486_v8  ;;  %v450_v23 = vsel %vm442_vm4, %v1798_v61, %v1491_v10  ;;  %v449_v57 = vsel %vm442_vm4, %v1777_v47, %v1490_v11  ;;  %v1592_v8 = vld [vmem:[%s2299_s5] sm:$0xff]   ;;  %v1595_v28 = vld [vmem:[%s2299_s5 + $0x18] sm:$0xff]   ;;  %v1597_v10 = vld [vmem:[%s2299_s5 + $0x28] sm:$0xff]  }
 0x16a   :  { %v478_v15 = vpack.c.bf16 %v465_v14, %v464_v12  ;;  %v1494_v18 = vpop.permute.xlu1 %1493  ;;  %v1499_v19 = vpop.permute.xlu0 %1498  ;;  %v1630_v9 = vmov 0   ;;  %v1596_v22 = vld [vmem:[%s2299_s5 + $0x20] sm:$0xff]   ;;  %v1598_v11 = vld [vmem:[%s2299_s5 + $0x30] sm:$0xff]   ;;  %v1599_v12 = vld [vmem:[%s2299_s5 + $0x38] sm:$0xff]  }
 0x16b   :  { %v1496_v20 = vunpack.i.h.bf16 %v1494_v18  ;;  %v1495_v21 = vunpack.i.l.bf16 %v1494_v18  ;;  %v1501_v27 = vunpack.i.h.bf16 %v1499_v19  ;;  %v1500_v30 = vunpack.i.l.bf16 %v1499_v19  ;;  %964 = vmatprep.subr.bf16.mxu0 %v1630_v9  ;;  %1425 = vmatprep.subr.bf16.mxu1 %v1630_v9  ;;  %v1600_v14 = vld [vmem:[%s2299_s5 + $0x40] sm:$0xff]   ;;  %v1602_v18 = vld [vmem:[%s2299_s5 + $0x50] sm:$0xff]  }
 0x16c   :  { %1396 = vmatprep.mubr.msk.bf16.mxu1 %vm539_vm6, %v478_v15  ;;  %965 = vmatpush1.bf16.msra.mxu0 %v1592_v8  ;;  %v1601_v15 = vld [vmem:[%s2299_s5 + $0x48] sm:$0xff]   ;;  %v2007_v19 = vld [vmem:[%s2298_s4] ss:$0 sm:$0xff] }
 0x16d   :  { %v466_v51 = vsel %vm459_vm5, %v449_v57, %v1495_v21  ;;  %v467_v33 = vsel %vm459_vm5, %v450_v23, %v1496_v20  ;;  %v452_v40 = vsel %vm442_vm4, %v1826_v24, %v1501_v27  ;;  %v451_v61 = vsel %vm442_vm4, %v1819_v17, %v1500_v30  ;;  %1437 = vmatpush1.bf16.msra.mxu1 %v1592_v8 }
 0x16e   :  { %v479_v34 = vpack.c.bf16 %v467_v33, %v466_v51  ;;  %v1509_v35 = vpop.permute.xlu1 %1508  ;;  %v1504_v36 = vpop.permute.xlu0 %1503  ;;  %966 = vmatprep.subr.bf16.mxu0 %v1630_v9  ;;  %1426 = vmatprep.subr.bf16.mxu1 %v1630_v9  ;;  %v1603_v33 = vld [vmem:[%s2299_s5 + $0x58] sm:$0xff]  }
 0x16f   :  { %v1506_v38 = vunpack.i.h.bf16 %v1504_v36  ;;  %v1505_v39 = vunpack.i.l.bf16 %v1504_v36  ;;  %v1511_v47 = vunpack.i.h.bf16 %v1509_v35  ;;  %v1510_v41 = vunpack.i.l.bf16 %v1509_v35 }
 0x170   :  { %1397 = vmatmul.mubr.msk.bf16.gmra.mrb[4].mxu1 %vm539_vm6, %v479_v34 }
 0x171   :  { %v468_v37 = vsel %vm459_vm5, %v451_v61, %v1505_v39  ;;  %v469_v42 = vsel %vm459_vm5, %v452_v40, %v1506_v38  ;;  %v454_v32 = vsel %vm442_vm4, %v1831_v31, %v1511_v47  ;;  %v453_v24 = vsel %vm442_vm4, %v1817_v16, %v1510_v41 }
 0x172   :  { %v480_v43 = vpack.c.bf16 %v469_v42, %v468_v37  ;;  %v1514_v44 = vpop.permute.xlu1 %1513  ;;  %v1524_v45 = vpop.permute.xlu0 %1523 }
 0x173   :  { %v1516_v46 = vunpack.i.h.bf16 %v1514_v44  ;;  %v1515_v48 = vunpack.i.l.bf16 %v1514_v44  ;;  %v1526_v17 = vunpack.i.h.bf16 %v1524_v45  ;;  %v1525_v49 = vunpack.i.l.bf16 %v1524_v45 }
 0x174   :  { %1400 = vmatprep.mubr.msk.bf16.mxu1 %vm539_vm6, %v480_v43 }
 0x175   :  { %v470_v50 = vsel %vm459_vm5, %v453_v24, %v1515_v48  ;;  %v471_v52 = vsel %vm459_vm5, %v454_v32, %v1516_v46  ;;  %v456_v62 = vsel %vm442_vm4, %v1869_v4, %v1526_v17  ;;  %v455_v31 = vsel %vm442_vm4, %v1856_v56, %v1525_v49 }
 0x176   :  { %v481_v53 = vpack.c.bf16 %v471_v52, %v470_v50  ;;  %v1519_v54 = vpop.permute.xlu1 %1518  ;;  %v1529_v58 = vpop.permute.xlu0 %1528 }
 0x177   :  { %v1531_v59 = vunpack.i.h.bf16 %v1529_v58  ;;  %v1530_v60 = vunpack.i.l.bf16 %v1529_v58  ;;  %v1521_v16 = vunpack.i.h.bf16 %v1519_v54  ;;  %v1520_v26 = vunpack.i.l.bf16 %v1519_v54 }
 0x178   :  { %1401 = vmatmul.mubr.msk.bf16.gmra.mrb[8].mxu1 %vm539_vm6, %v481_v53 }
 0x179   :  { %v472_v29 = vsel %vm459_vm5, %v455_v31, %v1530_v60  ;;  %v473_v63 = vsel %vm459_vm5, %v456_v62, %v1531_v59  ;;  %v458_v5 = vsel %vm442_vm4, %v1867_v3, %v1521_v16  ;;  %v457_v4 = vsel %vm442_vm4, %v1854_v55, %v1520_v26  ;;  %v1593_v55 = vld [vmem:[%s2299_s5 + $0x8] sm:$0xff]   ;;  %v1594_v3 = vld [vmem:[%s2299_s5 + $0x10] sm:$0xff]  }
 0x17a   :  { %v482_v0 = vpack.c.bf16 %v473_v63, %v472_v29  ;;  %v1534_v1 = vpop.permute.xlu1 %1533  ;;  %967 = vmatpush1.bf16.msra.mxu0 %v1593_v55  ;;  %1438 = vmatpush1.bf16.msra.mxu1 %v1593_v55 }
 0x17b   :  { %v1536_v2 = vunpack.i.h.bf16 %v1534_v1  ;;  %v1535_v13 = vunpack.i.l.bf16 %v1534_v1  ;;  %968 = vmatprep.subr.bf16.mxu0 %v1630_v9  ;;  %1427 = vmatprep.subr.bf16.mxu1 %v1630_v9 }
 0x17c   :  { %1404 = vmatprep.mubr.msk.bf16.mxu1 %vm539_vm6, %v482_v0 }
 0x17d   :  { %v474_v56 = vsel %vm459_vm5, %v457_v4, %v1535_v13  ;;  %v475_v6 = vsel %vm459_vm5, %v458_v5, %v1536_v2 }
 0x17e   :  { %v483_v7 = vpack.c.bf16 %v475_v6, %v474_v56  ;;  %969 = vmatpush1.bf16.msra.mxu0 %v1594_v3  ;;  %1439 = vmatpush1.bf16.msra.mxu1 %v1594_v3 }
 0x17f   :  { %970 = vmatprep.subr.bf16.mxu0 %v1630_v9  ;;  %1428 = vmatprep.subr.bf16.mxu1 %v1630_v9 }
 0x180   :  { %1405 = vmatmul.mubr.msk.bf16.gmra.mrb[12].mxu1 %vm539_vm6, %v483_v7 }
 0x182   :  { %971 = vmatpush1.bf16.msra.mxu0 %v1595_v28  ;;  %1440 = vmatpush1.bf16.msra.mxu1 %v1595_v28 }
 0x183   :  { %972 = vmatprep.subr.bf16.mxu0 %v1630_v9  ;;  %1429 = vmatprep.subr.bf16.mxu1 %v1630_v9 }
 0x186   :  { %973 = vmatpush1.bf16.msra.mxu0 %v1596_v22  ;;  %1441 = vmatpush1.bf16.msra.mxu1 %v1596_v22 }
 0x187   :  { %974 = vmatprep.subr.bf16.mxu0 %v1630_v9  ;;  %1430 = vmatprep.subr.bf16.mxu1 %v1630_v9 }
 0x18a   :  { %975 = vmatpush1.bf16.msra.mxu0 %v1597_v10  ;;  %1442 = vmatpush1.bf16.msra.mxu1 %v1597_v10 }
 0x18b   :  { %976 = vmatprep.subr.bf16.mxu0 %v1630_v9  ;;  %1431 = vmatprep.subr.bf16.mxu1 %v1630_v9 }
 0x18e   :  { %977 = vmatpush1.bf16.msra.mxu0 %v1598_v11  ;;  %1443 = vmatpush1.bf16.msra.mxu1 %v1598_v11 }
 0x18f   :  { %978 = vmatprep.subr.bf16.mxu0 %v1630_v9  ;;  %1432 = vmatprep.subr.bf16.mxu1 %v1630_v9 }
 0x192   :  { %979 = vmatpush1.bf16.msra.mxu0 %v1599_v12  ;;  %1444 = vmatpush1.bf16.msra.mxu1 %v1599_v12 }
 0x193   :  { %980 = vmatprep.subr.bf16.mxu0 %v1630_v9  ;;  %1433 = vmatprep.subr.bf16.mxu1 %v1630_v9 }
 0x196   :  { %981 = vmatpush1.bf16.msra.mxu0 %v1600_v14  ;;  %1445 = vmatpush1.bf16.msra.mxu1 %v1600_v14 }
 0x197   :  { %982 = vmatprep.subr.bf16.mxu0 %v1630_v9  ;;  %1434 = vmatprep.subr.bf16.mxu1 %v1630_v9 }
 0x19a   :  { %983 = vmatpush1.bf16.msra.mxu0 %v1601_v15  ;;  %1446 = vmatpush1.bf16.msra.mxu1 %v1601_v15 }
 0x19b   :  { %984 = vmatprep.subr.bf16.mxu0 %v1630_v9  ;;  %1435 = vmatprep.subr.bf16.mxu1 %v1630_v9 }
 0x19e   :  { %985 = vmatpush1.bf16.msra.mxu0 %v1602_v18  ;;  %1447 = vmatpush1.bf16.msra.mxu1 %v1602_v18 }
 0x19f   :  { %986 = vmatprep.subr.bf16.mxu0 %v1630_v9  ;;  %1436 = vmatprep.subr.bf16.mxu1 %v1630_v9 }
 0x1a2   :  { %987 = vmatpush1.bf16.msra.mxu0 %v1603_v33  ;;  %1448 = vmatpush1.bf16.msra.mxu1 %v1603_v33 }
 0x238   :  { %v1394_v20 = vpop.f32.mrb[0].mxu1 }
 0x239   :  { %v607_v21 = vadd.f32 %v1394_v20, %v2007_v19  ;;  %v598_v23 = vpop.f32.mrb[1].mxu1 }
 0x23a   :  { %v599_v57 = vadd.f32 %v2007_v19, %v598_v23  ;;  %v1395_v27 = vpop.f32.mrb[2].mxu1 }
 0x23b   :  { %v2011_v30 = vmax.f32 %v607_v21, 0.0  ;;  %v601_v51 = vpop.f32.mrb[3].mxu1  ;;  %v610_v36 = vadd.f32 %v1395_v27, %v2007_v19 }
 0x23c   :  { %v2016_v34 = vmax.f32 %v599_v57, 0.0  ;;  %v602_v35 = vadd.f32 %v2007_v19, %v601_v51 }
 0x23d   :  { %v679_v39 = vrot.slane %v2011_v30, 1  ;;  %v711_v40 = vrot.slane %v2011_v30, 2  ;;  %v2028_v42 = vmax.f32 %v610_v36, 0.0 }
 0x23e   :  { %v2020_v38 = vmax.f32 %v602_v35, 0.0  ;;  %v677_v61 = vrot.slane %v2016_v34, 1  ;;  %v709_v47 = vrot.slane %v2016_v34, 2 }
 0x23f   :  { %v680_v53 = vrot.slane %v2028_v42, 1 }
 0x240   :  { %v678_v41 = vrot.slane %v2020_v38, 1  ;;  %v710_v37 = vrot.slane %v2020_v38, 2 }
 0x241   :  { %v705_v26 = vsel %vm264_vm3, %v679_v39, %v680_v53 }
 0x242   :  { %v738_v43 = vsel %vm297_vm2, %v710_v37, %v711_v40  ;;  %v739_v44 = vsel %vm297_vm2, %v709_v47, %v710_v37  ;;  %v706_v45 = vsel %vm264_vm3, %v678_v41, %v679_v39  ;;  %v707_v46 = vsel %vm264_vm3, %v677_v61, %v678_v41 }
 0x243   :  { %v1398_v48 = vpop.f32.mrb[4].mxu1  ;;  %v822_v32 = vpack.c.bf16 %v738_v43, %v739_v44  ;;  %v1537_v24 = vpack.i.bf16 %v706_v45, %v707_v46 }
 0x244   :  { %v623_v17 = vadd.f32 %v1398_v48, %v2007_v19  ;;  %v614_v49 = vpop.f32.mrb[5].mxu1 }
 0x245   :  { %v615_v50 = vadd.f32 %v2007_v19, %v614_v49  ;;  %v1399_v52 = vpop.f32.mrb[6].mxu1  ;;  %1324 = vmatprep.mubr.msk.bf16.mxu0 %vm459_vm5, %v822_v32  ;;  %1538 = vrot.lane.b32.xlu0 %v1537_v24, %s1628_s3 }
 0x246   :  { %v617_v54 = vpop.f32.mrb[7].mxu1  ;;  %v2049_v58 = vmax.f32 %v623_v17, 0.0  ;;  %v626_v60 = vadd.f32 %v1399_v52, %v2007_v19 }
 0x247   :  { %v2051_v59 = vmax.f32 %v615_v50, 0.0  ;;  %v618_v62 = vadd.f32 %v2007_v19, %v617_v54 }
 0x248   :  { %v683_v29 = vrot.slane %v2049_v58, 1  ;;  %v2061_v63 = vmax.f32 %v626_v60, 0.0 }
 0x249   :  { %v681_v31 = vrot.slane %v2051_v59, 1  ;;  %v2056_v16 = vmax.f32 %v618_v62, 0.0 }
 0x24a   :  { %v684_v28 = vrot.slane %v2061_v63, 1 }
 0x24b   :  { %v682_v0 = vrot.slane %v2056_v16, 1  ;;  %v1402_v1 = vpop.f32.mrb[8].mxu1  ;;  %v704_v2 = vsel %vm264_vm3, %v680_v53, %v681_v31 }
 0x24c   :  { %v639_v13 = vadd.f32 %v1402_v1, %v2007_v19  ;;  %v630_v5 = vpop.f32.mrb[9].mxu1  ;;  %v1542_v4 = vpack.i.bf16 %v704_v2, %v705_v26  ;;  %v701_v57 = vsel %vm264_vm3, %v683_v29, %v684_v28 }
 0x24d   :  { %v631_v56 = vadd.f32 %v2007_v19, %v630_v5  ;;  %v1403_v6 = vpop.f32.mrb[10].mxu1  ;;  %v702_v7 = vsel %vm264_vm3, %v682_v0, %v683_v29  ;;  %v703_v8 = vsel %vm264_vm3, %v681_v31, %v682_v0 }
 0x24e   :  { %v642_v9 = vadd.f32 %v1403_v6, %v2007_v19  ;;  %v633_v55 = vpop.f32.mrb[11].mxu1  ;;  %1543 = vrot.lane.b32.xlu1 %v1542_v4, %s1628_s3  ;;  %v1547_v3 = vpack.i.bf16 %v702_v7, %v703_v8  ;;  %v2075_v22 = vmax.f32 %v639_v13, 0.0 }
 0x24f   :  { %v2077_v10 = vmax.f32 %v631_v56, 0.0  ;;  %v634_v11 = vadd.f32 %v2007_v19, %v633_v55 }
 0x250   :  { %1548 = vrot.lane.b32.xlu0 %v1547_v3, %s1628_s3  ;;  %v2082_v14 = vmax.f32 %v642_v9, 0.0  ;;  %v687_v18 = vrot.slane %v2075_v22, 1  ;;  %v712_v3 = vrot.slane %v2028_v42, 2 }
 0x251   :  { %v685_v12 = vrot.slane %v2077_v10, 1  ;;  %v2084_v15 = vmax.f32 %v634_v11, 0.0 }
 0x252   :  { %v688_v35 = vrot.slane %v2082_v14, 1 }
 0x253   :  { %v686_v20 = vrot.slane %v2084_v15, 1  ;;  %v1406_v21 = vpop.f32.mrb[12].mxu1  ;;  %v700_v23 = vsel %vm264_vm3, %v684_v28, %v685_v12 }
 0x254   :  { %v655_v27 = vadd.f32 %v1406_v21, %v2007_v19  ;;  %v646_v51 = vpop.f32.mrb[13].mxu1  ;;  %v1552_v33 = vpack.i.bf16 %v700_v23, %v701_v57  ;;  %v697_v50 = vsel %vm264_vm3, %v687_v18, %v688_v35  ;;  %v737_v23 = vsel %vm297_vm2, %v711_v40, %v712_v3 }
 0x255   :  { %v647_v36 = vadd.f32 %v2007_v19, %v646_v51  ;;  %v1407_v39 = vpop.f32.mrb[14].mxu1  ;;  %v698_v41 = vsel %vm264_vm3, %v686_v20, %v687_v18  ;;  %v699_v37 = vsel %vm264_vm3, %v685_v12, %v686_v20  ;;  %v715_v51 = vrot.slane %v2049_v58, 2 }
 0x256   :  { %v2099_v43 = vmax.f32 %v655_v27, 0.0  ;;  %v658_v44 = vadd.f32 %v1407_v39, %v2007_v19  ;;  %v649_v45 = vpop.f32.mrb[15].mxu1  ;;  %1553 = vrot.lane.b32.xlu1 %v1552_v33, %s1628_s3  ;;  %v1557_v46 = vpack.i.bf16 %v698_v41, %v699_v37  ;;  %v714_v27 = vrot.slane %v2056_v16, 2 }
 0x257   :  { %v2103_v48 = vmax.f32 %v647_v36, 0.0  ;;  %v650_v32 = vadd.f32 %v2007_v19, %v649_v45 }
 0x258   :  { %v2106_v24 = vmax.f32 %v658_v44, 0.0  ;;  %1558 = vrot.lane.b32.xlu0 %v1557_v46, %s1628_s3  ;;  %v691_v52 = vrot.slane %v2099_v43, 1  ;;  %v723_v53 = vrot.slane %v2099_v43, 2 }
 0x259   :  { %v689_v17 = vrot.slane %v2103_v48, 1  ;;  %v2110_v49 = vmax.f32 %v650_v32, 0.0  ;;  %v721_v54 = vrot.slane %v2103_v48, 2  ;;  %v717_v32 = vrot.slane %v2077_v10, 2 }
 0x25a   :  { %v724_v60 = vrot.slane %v2106_v24, 2  ;;  %v692_v19 = vrot.slane %v2106_v24, 1 }
 0x25b   :  { %v690_v62 = vrot.slane %v2110_v49, 1  ;;  %v722_v31 = vrot.slane %v2110_v49, 2  ;;  %v696_v26 = vsel %vm264_vm3, %v688_v35, %v689_v17 }
 0x25c   :  { %v1567_v29 = vpack.i.bf16 %v696_v26, %v697_v50  ;;  %v2125_v0 = vsel %vm297_vm2, %v723_v53, %v724_v60  ;;  %v2142_v6 = vsel %vm297_vm2, %v724_v60, %v709_v47  ;;  %v693_v7 = vsel %vm264_vm3, %v691_v52, %v692_v19 }
 0x25d   :  { %v726_v1 = vsel %vm297_vm2, %v722_v31, %v723_v53  ;;  %v727_v2 = vsel %vm297_vm2, %v721_v54, %v722_v31  ;;  %v694_v13 = vsel %vm264_vm3, %v690_v62, %v691_v52  ;;  %v695_v5 = vsel %vm264_vm3, %v689_v17, %v690_v62 }
 0x25e   :  { %1568 = vrot.lane.b32.xlu0 %v1567_v29, %s1628_s3  ;;  %v834_v4 = vpack.c.bf16 %v726_v1, %v727_v2  ;;  %v1562_v56 = vpack.i.bf16 %v694_v13, %v695_v5  ;;  %v708_v8 = vsel %vm264_vm3, %v692_v19, %v677_v61  ;;  %v836_v9 = vpack.c.bf16 %v2142_v6, %v2125_v0 }
 0x25f   :  { %v1572_v55 = vpack.i.bf16 %v708_v8, %v693_v7  ;;  %v713_v47 = vrot.slane %v2051_v59, 2  ;;  %v716_v17 = vrot.slane %v2061_v63, 2  ;;  %v718_v19 = vrot.slane %v2084_v15, 2 }
 0x260   :  { %1330 = vmatprep.mubr.msk.bf16.mxu1 %vm459_vm5, %v834_v4  ;;  %1563 = vrot.lane.b32.xlu1 %v1562_v56, %s1628_s3  ;;  %v719_v29 = vrot.slane %v2075_v22, 2 }
 0x261   :  { %v736_v61 = vsel %vm297_vm2, %v712_v3, %v713_v47  ;;  %v735_v39 = vsel %vm297_vm2, %v713_v47, %v714_v27  ;;  %v733_v60 = vsel %vm297_vm2, %v715_v51, %v716_v17  ;;  %v731_v2 = vsel %vm297_vm2, %v717_v32, %v718_v19 }
 0x262   :  { %v824_v57 = vpack.c.bf16 %v736_v61, %v737_v23  ;;  %v730_v1 = vsel %vm297_vm2, %v718_v19, %v719_v29  ;;  %v720_v61 = vrot.slane %v2082_v14, 2 }
 0x263   :  { %v830_v8 = vpack.c.bf16 %v730_v1, %v731_v2 }
 0x264   :  { %1573 = vrot.lane.b32.xlu1 %v1572_v55, %s1628_s3 }
 0x2b7   :  { %v1539_v28 = vpop.permute.xlu0 %1538 }
 0x2b8   :  { %v1541_v11 = vunpack.i.h.bf16 %v1539_v28  ;;  %v1540_v12 = vunpack.i.l.bf16 %v1539_v28 }
 0x2ba   :  { %v806_v18 = vsel %vm459_vm5, %v2020_v38, %v1541_v11  ;;  %v805_v20 = vsel %vm459_vm5, %v2016_v34, %v1540_v12  ;;  %v734_v34 = vsel %vm297_vm2, %v714_v27, %v715_v51 }
 0x2bb   :  { %v821_v21 = vpack.c.bf16 %v806_v18, %v805_v20  ;;  %v826_v46 = vpack.c.bf16 %v734_v34, %v735_v39 }
 0x2bd   :  { %997 = vmatmul.mubr.bf16.vlgmr.msra.gmra.mrb[16].mxu0 %v821_v21  ;;  %v728_v21 = vsel %vm297_vm2, %v720_v61, %v721_v54 }
 0x2be   :  { %1325 = vmatprep.mubr.msk.bf16.mxu0 %vm459_vm5, %v824_v57 }
 0x2c0   :  { %v1544_v33 = vpop.permute.xlu1 %1543 }
 0x2c1   :  { %v1546_v35 = vunpack.i.h.bf16 %v1544_v33  ;;  %v1545_v38 = vunpack.i.l.bf16 %v1544_v33  ;;  %v1631_v33 = vmov 0.0|0.0  }
 0x2c2   :  { %v1549_v36 = vpop.permute.xlu0 %1548  ;;  %1419 = vmatprep.subr.bf16.mxu1 %v1631_v33 }
 0x2c3   :  { %v807_v40 = vsel %vm459_vm5, %v2011_v30, %v1545_v38  ;;  %v808_v41 = vsel %vm459_vm5, %v2028_v42, %v1546_v35  ;;  %v1551_v44 = vunpack.i.h.bf16 %v1549_v36  ;;  %v1550_v45 = vunpack.i.l.bf16 %v1549_v36  ;;  %v2244_v36 = vld [vmem:[%s2300_s6] ss:$0 sm:$0xff] }
 0x2c4   :  { %v823_v37 = vpack.c.bf16 %v808_v41, %v807_v40  ;;  %v732_v42 = vsel %vm297_vm2, %v716_v17, %v717_v32  ;;  %v1633_v38 = vmov 0.0  }
 0x2c5   :  { %v809_v50 = vsel %vm459_vm5, %v2051_v59, %v1550_v45  ;;  %v810_v30 = vsel %vm459_vm5, %v2056_v16, %v1551_v44  ;;  %v828_v26 = vpack.c.bf16 %v732_v42, %v733_v60 }
 0x2c6   :  { %1005 = vmatmul.mubr.bf16.gmra.mrb[20].mxu0 %v823_v37  ;;  %v825_v53 = vpack.c.bf16 %v810_v30, %v809_v50 }
 0x2c7   :  { %1326 = vmatprep.mubr.msk.bf16.mxu0 %vm459_vm5, %v826_v46 }
 0x2c8   :  { %v1554_v52 = vpop.permute.xlu1 %1553 }
 0x2c9   :  { %v1556_v62 = vunpack.i.h.bf16 %v1554_v52  ;;  %v1555_v31 = vunpack.i.l.bf16 %v1554_v52 }
 0x2ca   :  { %v1559_v13 = vpop.permute.xlu0 %1558 }
 0x2cb   :  { %v811_v59 = vsel %vm459_vm5, %v2049_v58, %v1555_v31  ;;  %v812_v16 = vsel %vm459_vm5, %v2061_v63, %v1556_v62  ;;  %v1561_v55 = vunpack.i.h.bf16 %v1559_v13  ;;  %v1560_v47 = vunpack.i.l.bf16 %v1559_v13 }
 0x2cc   :  { %v827_v7 = vpack.c.bf16 %v812_v16, %v811_v59 }
 0x2cd   :  { %v814_v18 = vsel %vm459_vm5, %v2084_v15, %v1561_v55 }
 0x2ce   :  { %1013 = vmatmul.mubr.bf16.gmra.mrb[24].mxu0 %v825_v53 }
 0x2cf   :  { %1327 = vmatprep.mubr.msk.bf16.mxu0 %vm459_vm5, %v828_v26 }
 0x2d0   :  { %v1569_v20 = vpop.permute.xlu0 %1568 }
 0x2d1   :  { %v1570_v57 = vunpack.i.l.bf16 %v1569_v20 }
 0x2d2   :  { %v1564_v5 = vpop.permute.xlu1 %1563 }
 0x2d3   :  { %v1566_v4 = vunpack.i.h.bf16 %v1564_v5  ;;  %v1565_v56 = vunpack.i.l.bf16 %v1564_v5 }
 0x2d5   :  { %v818_v58 = vsel %vm459_vm5, %v2110_v49, %v1566_v4  ;;  %v817_v63 = vsel %vm459_vm5, %v2103_v48, %v1565_v56  ;;  %v813_v49 = vsel %vm459_vm5, %v2077_v10, %v1560_v47  ;;  %v1571_v10 = vunpack.i.h.bf16 %v1569_v20 }
 0x2d6   :  { %v833_v3 = vpack.c.bf16 %v818_v58, %v817_v63  ;;  %v1574_v28 = vpop.permute.xlu1 %1573  ;;  %1021 = vmatmul.mubr.bf16.gmra.mrb[28].mxu0 %v827_v7  ;;  %v829_v6 = vpack.c.bf16 %v814_v18, %v813_v49  ;;  %v815_v48 = vsel %vm459_vm5, %v2075_v22, %v1570_v57  ;;  %v1160_v22 = vld [vmem:[%s2301_s7 + $0x10] sm:$0xff] }
 0x2d7   :  { %v1576_v11 = vunpack.i.h.bf16 %v1574_v28  ;;  %v1575_v12 = vunpack.i.l.bf16 %v1574_v28  ;;  %1328 = vmatprep.mubr.msk.bf16.mxu0 %vm459_vm5, %v830_v8 }
 0x2d8   :  { %1045 = vmatmul.mubr.bf16.vlgmr.msra.gmra.mrb[16].mxu1 %v833_v3 }
 0x2d9   :  { %1331 = vmatprep.mubr.msk.bf16.mxu1 %vm459_vm5, %v836_v9  ;;  %v819_v23 = vsel %vm459_vm5, %v2099_v43, %v1575_v12  ;;  %v820_v0 = vsel %vm459_vm5, %v2106_v24, %v1576_v11  ;;  %v729_v9 = vsel %vm297_vm2, %v719_v29, %v720_v61  ;;  %v816_v43 = vsel %vm459_vm5, %v2082_v14, %v1571_v10  ;;  %v1159_v24 = vld [vmem:[%s2301_s7 + $0x8] sm:$0xff]  ;;  %v1161_v14 = vld [vmem:[%s2301_s7 + $0x18] sm:$0xff] }
 0x2da   :  { %v832_v27 = vpack.c.bf16 %v728_v21, %v729_v9  ;;  %v835_v15 = vpack.c.bf16 %v820_v0, %v819_v23  ;;  %v831_v54 = vpack.c.bf16 %v816_v43, %v815_v48  ;;  %v1420_v51 = vpack.c.bf16 %v1159_v24, %v1158_v25 }
 0x2db   :  { %v1423_v35 = vpack.c.bf16 %v1161_v14, %v1160_v22 }
 0x2dc   :  { %1421 = vmatpush3.bf16.msra.mxu1 %v1420_v51 }
 0x2dd   :  { %1422 = vmatprep.subr.bf16.mxu1 %v1631_v33 }
 0x2de   :  { %1029 = vmatmul.mubr.bf16.gmra.mrb[32].mxu0 %v829_v6 }
 0x2df   :  { %1329 = vmatprep.mubr.msk.bf16.mxu0 %vm459_vm5, %v832_v27 }
 0x2e0   :  { %1053 = vmatmul.mubr.bf16.gmra.mrb[20].mxu1 %v835_v15 }
 0x2e1   :  { %1416 = vmatprep.mubr.msk.f32.mxu1 %vm1632_vm7, %v1633_v38  ;;  %1424 = vmatpush3.bf16.msra.mxu1 %v1423_v35 }
 0x2e6   :  { %1037 = vmatmul.mubr.bf16.gmra.mrb[36].mxu0 %v831_v54 }
 0x390   :  { %v998_v34 = vpop.f32.mrb[16].mxu0 }
 0x391   :  { %v999_v39 = vadd.f32 %v2244_v36, %v998_v34  ;;  %v1000_v40 = vpop.f32.mrb[17].mxu0 }
 0x392   :  { %v1001_v41 = vpop.f32.mrb[18].mxu0 }
 0x393   :  { %v1061_v37 = vmax.f32 %v999_v39, 0.0  ;;  %v1002_v44 = vadd.f32 %v2244_v36, %v1001_v41  ;;  %v1003_v45 = vpop.f32.mrb[19].mxu0 }
 0x395   :  { %v1062_v46 = vmax.f32 %v1002_v44, 0.0  ;;  %v1077_v32 = vsel %vm442_vm4, %v1061_v37, 0.0 }
 0x397   :  { %v1079_v17 = vsel %vm1078_vm8, %v1062_v46, 0.0 }
 0x398   :  { %v1080_v50 = vadd.f32 %v1079_v17, %v1077_v32 }
 0x399   :  { %v1006_v30 = vpop.f32.mrb[20].mxu0 }
 0x39a   :  { %v1081_v52 = vrot.slane %v1080_v50, 4  ;;  %v1007_v42 = vadd.f32 %v2244_v36, %v1006_v30  ;;  %v1008_v53 = vpop.f32.mrb[21].mxu0 }
 0x39b   :  { %v1009_v60 = vpop.f32.mrb[22].mxu0 }
 0x39c   :  { %v1082_v19 = vadd.f32 %v1081_v52, %v1080_v50  ;;  %v1063_v62 = vmax.f32 %v1007_v42, 0.0  ;;  %v1010_v31 = vadd.f32 %v2244_v36, %v1009_v60  ;;  %v1011_v26 = vpop.f32.mrb[23].mxu0 }
 0x39e   :  { %v1064_v29 = vmax.f32 %v1010_v31, 0.0  ;;  %v1083_v59 = vrot.slane %v1082_v19, 2  ;;  %v1087_v16 = vsel %vm442_vm4, %v1063_v62, 0.0 }
 0x3a0   :  { %v1088_v1 = vsel %vm1078_vm8, %v1064_v29, 0.0  ;;  %v1084_v56 = vadd.f32 %v1083_v59, %v1082_v19 }
 0x3a1   :  { %v1089_v2 = vadd.f32 %v1088_v1, %v1087_v16  ;;  %v1014_v13 = vpop.f32.mrb[24].mxu0 }
 0x3a2   :  { %v1015_v5 = vadd.f32 %v2244_v36, %v1014_v13  ;;  %v1016_v4 = vpop.f32.mrb[25].mxu0  ;;  %v1085_v28 = vrot.slane %v1084_v56, 1 }
 0x3a3   :  { %v1090_v7 = vrot.slane %v1089_v2, 4  ;;  %v1017_v8 = vpop.f32.mrb[26].mxu0 }
 0x3a4   :  { %v1065_v55 = vmax.f32 %v1015_v5, 0.0  ;;  %v1018_v47 = vadd.f32 %v2244_v36, %v1017_v8  ;;  %v1019_v58 = vpop.f32.mrb[27].mxu0  ;;  %v1086_v0 = vadd.f32 %v1085_v28, %v1084_v56 }
 0x3a5   :  { %v1091_v63 = vadd.f32 %v1090_v7, %v1089_v2 }
 0x3a6   :  { %v1066_v3 = vmax.f32 %v1018_v47, 0.0  ;;  %v1096_v12 = vsel %vm442_vm4, %v1065_v55, 0.0  ;;  %v1150_v38 = vmul.f32 0.1, %v1086_v0 }
 0x3a7   :  { %v1092_v11 = vrot.slane %v1091_v63, 2 }
 0x3a8   :  { %v1097_v61 = vsel %vm1078_vm8, %v1066_v3, 0.0 }
 0x3a9   :  { %v1093_v49 = vadd.f32 %v1092_v11, %v1091_v63  ;;  %v1098_v18 = vadd.f32 %v1097_v61, %v1096_v12  ;;  %v1022_v20 = vpop.f32.mrb[28].mxu0 }
 0x3aa   :  { %v1023_v21 = vadd.f32 %v2244_v36, %v1022_v20  ;;  %v1024_v23 = vpop.f32.mrb[29].mxu0 }
 0x3ab   :  { %v1094_v6 = vrot.slane %v1093_v49, 1  ;;  %v1099_v9 = vrot.slane %v1098_v18, 4  ;;  %v1025_v10 = vpop.f32.mrb[30].mxu0  ;;  %v1046_v57 = vpop.f32.mrb[16].mxu1 }
 0x3ac   :  { %v1067_v27 = vmax.f32 %v1023_v21, 0.0  ;;  %v1026_v15 = vadd.f32 %v2244_v36, %v1025_v10  ;;  %v1047_v48 = vadd.f32 %v2244_v36, %v1046_v57  ;;  %v1027_v43 = vpop.f32.mrb[31].mxu0  ;;  %v1048_v54 = vpop.f32.mrb[17].mxu1 }
 0x3ad   :  { %v1095_v25 = vadd.f32 %v1094_v6, %v1093_v49  ;;  %v1100_v24 = vadd.f32 %v1099_v9, %v1098_v18  ;;  %v1049_v51 = vpop.f32.mrb[18].mxu1 }
 0x3ae   :  { %v1068_v33 = vmax.f32 %v1026_v15, 0.0  ;;  %v1073_v22 = vmax.f32 %v1047_v48, 0.0  ;;  %v1050_v14 = vadd.f32 %v2244_v36, %v1049_v51  ;;  %v1051_v35 = vpop.f32.mrb[19].mxu1  ;;  %v1105_v40 = vsel %vm442_vm4, %v1067_v27, 0.0 }
 0x3af   :  { %v1151_v34 = vmul.f32 0.1, %v1095_v25  ;;  %v1101_v39 = vrot.slane %v1100_v24, 2 }
 0x3b0   :  { %v1106_v41 = vsel %vm1078_vm8, %v1068_v33, 0.0  ;;  %v1074_v37 = vmax.f32 %v1050_v14, 0.0  ;;  %v1132_v17 = vsel %vm442_vm4, %v1073_v22, 0.0 }
 0x3b1   :  { %v1178_v44 = vsel %vm1177_vm9, %v1151_v34, %v1150_v38  ;;  %v1102_v45 = vadd.f32 %v1101_v39, %v1100_v24  ;;  %v1107_v46 = vadd.f32 %v1106_v41, %v1105_v40  ;;  %v1030_v32 = vpop.f32.mrb[32].mxu0 }
 0x3b2   :  { %v1133_v50 = vsel %vm1078_vm8, %v1074_v37, 0.0  ;;  %v1031_v30 = vadd.f32 %v2244_v36, %v1030_v32  ;;  %v1032_v52 = vpop.f32.mrb[33].mxu0 }
 0x3b3   :  { %v1103_v42 = vrot.slane %v1102_v45, 1  ;;  %v1108_v53 = vrot.slane %v1107_v46, 4  ;;  %v1134_v60 = vadd.f32 %v1133_v50, %v1132_v17  ;;  %v1033_v19 = vpop.f32.mrb[34].mxu0  ;;  %v1054_v62 = vpop.f32.mrb[20].mxu1 }
 0x3b4   :  { %v1069_v31 = vmax.f32 %v1031_v30, 0.0  ;;  %v1034_v26 = vadd.f32 %v2244_v36, %v1033_v19  ;;  %v1055_v29 = vadd.f32 %v2244_v36, %v1054_v62  ;;  %v1035_v59 = vpop.f32.mrb[35].mxu0  ;;  %v1056_v16 = vpop.f32.mrb[21].mxu1 }
 0x3b5   :  { %v1104_v1 = vadd.f32 %v1103_v42, %v1102_v45  ;;  %v1109_v2 = vadd.f32 %v1108_v53, %v1107_v46  ;;  %v1057_v13 = vpop.f32.mrb[22].mxu1  ;;  %v1135_v47 = vrot.slane %v1134_v60, 4 }
 0x3b6   :  { %v1070_v5 = vmax.f32 %v1034_v26, 0.0  ;;  %v1075_v4 = vmax.f32 %v1055_v29, 0.0  ;;  %v1058_v56 = vadd.f32 %v2244_v36, %v1057_v13  ;;  %v1059_v7 = vpop.f32.mrb[23].mxu1  ;;  %v1114_v58 = vsel %vm442_vm4, %v1069_v31, 0.0 }
 0x3b7   :  { %v1152_v8 = vmul.f32 0.1, %v1104_v1  ;;  %v1110_v55 = vrot.slane %v1109_v2, 2  ;;  %v1136_v10 = vadd.f32 %v1135_v47, %v1134_v60 }
 0x3b8   :  { %v1115_v63 = vsel %vm1078_vm8, %v1070_v5, 0.0  ;;  %v1076_v3 = vmax.f32 %v1058_v56, 0.0  ;;  %v1141_v49 = vsel %vm442_vm4, %v1075_v4, 0.0 }
 0x3b9   :  { %v1180_v28 = vsel %vm1179_vm10, %v1152_v8, %v1178_v44  ;;  %v1111_v11 = vadd.f32 %v1110_v55, %v1109_v2  ;;  %v1116_v12 = vadd.f32 %v1115_v63, %v1114_v58  ;;  %v1038_v61 = vpop.f32.mrb[36].mxu0  ;;  %v1137_v35 = vrot.slane %v1136_v10, 2  ;;  %v1332_v2 = vld [vmem:[%s2302_s8] ss:$0 sm:$0xff] }
 0x3ba   :  { %v1142_v18 = vsel %vm1078_vm8, %v1076_v3, 0.0  ;;  %v1039_v20 = vadd.f32 %v2244_v36, %v1038_v61  ;;  %v1040_v21 = vpop.f32.mrb[37].mxu0 }
 0x3bb   :  { %v1112_v23 = vrot.slane %v1111_v11, 1  ;;  %v1117_v0 = vrot.slane %v1116_v12, 4  ;;  %v1143_v6 = vadd.f32 %v1142_v18, %v1141_v49  ;;  %v1041_v9 = vpop.f32.mrb[38].mxu0  ;;  %v1138_v37 = vadd.f32 %v1137_v35, %v1136_v10 }
 0x3bc   :  { %v1042_v57 = vadd.f32 %v2244_v36, %v1041_v9  ;;  %v1043_v27 = vpop.f32.mrb[39].mxu0  ;;  %v1071_v54 = vmax.f32 %v1039_v20, 0.0 }
 0x3bd   :  { %v1113_v15 = vadd.f32 %v1112_v23, %v1111_v11  ;;  %v1118_v48 = vadd.f32 %v1117_v0, %v1116_v12  ;;  %v1144_v43 = vrot.slane %v1143_v6, 4  ;;  %v1139_v50 = vrot.slane %v1138_v37, 1 }
 0x3be   :  { %v1072_v25 = vmax.f32 %v1042_v57, 0.0  ;;  %v1123_v34 = vsel %vm442_vm4, %v1071_v54, 0.0 }
 0x3bf   :  { %v1153_v24 = vmul.f32 0.1, %v1113_v15  ;;  %v1119_v51 = vrot.slane %v1118_v48, 2  ;;  %v1145_v33 = vadd.f32 %v1144_v43, %v1143_v6  ;;  %v1140_v60 = vadd.f32 %v1139_v50, %v1138_v37 }
 0x3c0   :  { %v1124_v22 = vsel %vm1078_vm8, %v1072_v25, 0.0 }
 0x3c1   :  { %v1182_v14 = vsel %vm1181_vm11, %v1153_v24, %v1180_v28  ;;  %v1120_v38 = vadd.f32 %v1119_v51, %v1118_v48  ;;  %v1146_v39 = vrot.slane %v1145_v33, 2  ;;  %v1125_v40 = vadd.f32 %v1124_v22, %v1123_v34 }
 0x3c2   :  { %v1156_v26 = vmul.f32 0.1, %v1140_v60 }
 0x3c3   :  { %v1121_v36 = vrot.slane %v1120_v38, 1  ;;  %v1126_v41 = vrot.slane %v1125_v40, 4  ;;  %v1147_v45 = vadd.f32 %v1146_v39, %v1145_v33 }
 0x3c5   :  { %v1122_v44 = vadd.f32 %v1121_v36, %v1120_v38  ;;  %v1127_v46 = vadd.f32 %v1126_v41, %v1125_v40  ;;  %v1148_v52 = vrot.slane %v1147_v45, 1 }
 0x3c7   :  { %v1154_v32 = vmul.f32 0.1, %v1122_v44  ;;  %v1128_v17 = vrot.slane %v1127_v46, 2  ;;  %v1149_v19 = vadd.f32 %v1148_v52, %v1147_v45 }
 0x3c9   :  { %v1184_v30 = vsel %vm1183_vm12, %v1154_v32, %v1182_v14  ;;  %v1129_v42 = vadd.f32 %v1128_v17, %v1127_v46  ;;  %v1157_v29 = vmul.f32 0.1, %v1149_v19 }
 0x3cb   :  { %v1130_v53 = vrot.slane %v1129_v42, 1 }
 0x3cd   :  { %v1131_v62 = vadd.f32 %v1130_v53, %v1129_v42 }
 0x3cf   :  { %v1155_v31 = vmul.f32 0.1, %v1131_v62 }
 0x3d1   :  { %v1186_v59 = vsel %vm1185_vm13, %v1155_v31, %v1184_v30 }
 0x3d2   :  { %v1188_v16 = vsel %vm1187_vm14, %v1156_v26, %v1186_v59 }
 0x3d3   :  { %v1190_v1 = vsel %vm1189_vm15, %v1157_v29, %v1188_v16 }
 0x3d4   :  { %1417 = vmatmul.mubr.msk.f32.vlgmr.msra.gmra.mrb[24].mxu1 %vm442_vm4, %v1190_v1 }
 0x4a7   :  { %v1259_v13 = vpop.f32.mrb[24].mxu1 }
 0x4a8   :  { %v1260_v5 = vadd.f32 %v1332_v2, %v1259_v13  ;;  %v1418_v4 = vpop.f32.mrb[25].mxu1 }
 0x4aa   :  { %1263 = vst [vmem:[#allocation2] sm:$0xff] %v1260_v5 }
 0x4ab   :  { %1615 = shalt.err (!%p1612_p4)
}
 0x4ac   :  { %s1616_s10 = scalar_lea.hbm %s2303_s9, 128 }
 0x4ad   :  { %p1617_p5 = scmp.ne.s32.totalorder %s2303_s9, %s1616_s10  ;;  %p1620_p6 = scmp.lt.u32.totalorder %s1616_s10, %s2303_s9 }
 0x4af   :  { %p1622_p7 = pnand %p1620_p6, %p1617_p5 }
 0x4b1   :  { %1625 = shalt.err (!%p1622_p7)
}
 0x4b2   :  { %1273 = dma.vmem_to_hbm [thread:$0]  %s1271_s27, 128, %s2303_s9, [#allocation3]  }
 0x4b3   :  { %1626 = dma.done.wait [#allocation3], 128  }
 0x4b4   :  { %1627 = vsyncadd [#allocation3], 4294967168 }
 0x4b5   :  { %1277 = vsyncpa [#allocation3], 1 }

</bundles_post_ra>
